<compile_context>
chip_gen: v6e
topology: v6e:2x2x1
jax: 0.10.0
libtpu: 0.0.40
codegen_flags: <defaults>
</compile_context>

<pallas_src>
import jax
import jax.numpy as jnp
from jax.experimental import pallas as pl
from jax.experimental.pallas import tpu as pltpu


def _round_up(x, m):
    return (x + m - 1) // m * m


# ---------------------------------------------------------------------------
# Fused kernel:  lin = Dinv_t * (A_counts @ ((Dinv_s*X) @ W^T)) + b ; relu(lin)
#   grid = (row tiles of A, contraction tiles over source nodes)
# ---------------------------------------------------------------------------
def _gcn_kernel(a_ref, xs_ref, wt_ref, dinv_ref, b_ref, relu_ref, lin_ref):
    k = pl.program_id(1)

    @pl.when(k == 0)
    def _():
        lin_ref[...] = jnp.zeros_like(lin_ref)

    # xw_k = (Dinv_s * X)_k @ W^T  (tiny matmul, f32 accumulate)
    xw = jnp.dot(xs_ref[...], wt_ref[...], preferred_element_type=jnp.float32)

    # int8 edge counts -> bf16 on the VPU (exact for small counts); bf16 MXU
    # matmul with f32 accumulation directly into the resident output.
    a_bf16 = a_ref[...].astype(jnp.float32).astype(jnp.bfloat16)
    lin_ref[...] += jnp.dot(
        a_bf16, xw.astype(jnp.bfloat16), preferred_element_type=jnp.float32
    )

    @pl.when(k == pl.num_programs(1) - 1)
    def _():
        h = lin_ref[...] * dinv_ref[...] + b_ref[...]   # exact f32 Dinv_t + bias
        lin_ref[...] = h
        relu_ref[...] = jnp.maximum(h, 0.0)


def gnn_layer_forward(x, edge_index, weight, bias, *, tile=512):
    """Returns (relu(gcn_out), gcn_out), matching the PyTorch module."""
    n, in_feats = x.shape
    out_feats = weight.shape[0]

    # Large tiles amortise per-grid-step overhead on the memory-bound N^2
    # matmul; clamp so tiny demo graphs don't over-pad.  tm == tk == t.
    t = min(tile, _round_up(max(n, 1), 128))
    n_pad = _round_up(max(n, 1), t)
    out_pad = _round_up(out_feats, 128)            # lane-dense output width

    # ---- graph glue (plain JAX) -------------------------------------------
    # Self loops + A[target, source] edge counts, scattered directly into the
    # pre-padded int8 compute buffer (single O(N^2) pass).
    loop = jnp.arange(n, dtype=edge_index.dtype)
    src = jnp.concatenate([edge_index[0], loop])
    dst = jnp.concatenate([edge_index[1], loop])
    a_cnt = jnp.zeros((n_pad, n_pad), jnp.int8).at[dst, src].add(jnp.int8(1))

    # Degrees / deg^{-1/2} from the edge list (O(E), no dense pass).
    deg = jnp.zeros((n,), jnp.float32).at[dst].add(1.0)
    dinv = jnp.where(deg > 0, jax.lax.rsqrt(deg), 0.0)

    # Fold the source-side normalisation into X (exact, O(N*in_feats)).
    xs_pad = jnp.zeros((n_pad, in_feats), jnp.float32).at[:n, :].set(
        x * dinv[:, None]
    )
    wt_pad = jnp.zeros((in_feats, out_pad), jnp.float32).at[:, :out_feats].set(
        weight.T                                   # pre-transposed weight
    )
    b_pad = jnp.zeros((1, out_pad), jnp.float32).at[0, :out_feats].set(bias)
    dinv_pad = jnp.zeros((n_pad, 1), jnp.float32).at[:n, 0].set(dinv)

    grid = (n_pad // t, n_pad // t)
    row_tiles = grid[0]

    relu_pad, lin_pad = pl.pallas_call(
        _gcn_kernel,
        out_shape=(
            jax.ShapeDtypeStruct((n_pad, out_pad), jnp.float32),
            jax.ShapeDtypeStruct((n_pad, out_pad), jnp.float32),
        ),
        grid=grid,
        in_specs=[
            pl.BlockSpec((t, t), lambda i, k: (i, k)),              # A counts
            pl.BlockSpec((t, in_feats), lambda i, k: (k, 0)),       # Dinv_s * X
            pl.BlockSpec((in_feats, out_pad), lambda i, k: (0, 0)), # W^T (resident)
            pl.BlockSpec((t, 1), lambda i, k: (i, 0)),              # Dinv_t
            pl.BlockSpec((1, out_pad), lambda i, k: (0, 0)),        # bias (resident)
        ],
        out_specs=(
            pl.BlockSpec((t, out_pad), lambda i, k: (i, 0)),        # relu(out)
            pl.BlockSpec((t, out_pad), lambda i, k: (i, 0)),        # out (acc)
        ),
        compiler_params=pltpu.CompilerParams(
            dimension_semantics=("parallel", "arbitrary"),
            vmem_limit_bytes=32 * 1024 * 1024,      # >= v5e's 16 MiB default
        ),
        cost_estimate=pl.CostEstimate(
            flops=2 * n_pad * n_pad * out_pad
            + 2 * row_tiles * n_pad * in_feats * out_pad,
            transcendentals=0,
            bytes_accessed=(
                n_pad * n_pad * 1                       # int8 A stream
                + row_tiles * n_pad * in_feats * 4      # X re-streamed per row tile
                + in_feats * out_pad * 4                # resident W^T
                + n_pad * 4 + out_pad * 4               # dinv + bias
                + 2 * n_pad * out_pad * 4               # two f32 outputs
            ),
        ),
    )(a_cnt, xs_pad, wt_pad, dinv_pad, b_pad)

    return relu_pad[:n, :out_feats], lin_pad[:n, :out_feats]


# ---------------------------------------------------------------------------
# Plain-JAX reference (dense GCNConv + ReLU)
# ---------------------------------------------------------------------------
def _reference(x, edge_index, weight, bias):
    n = x.shape[0]
    row, col = edge_index[0], edge_index[1]
    loop = jnp.arange(n, dtype=edge_index.dtype)
    row = jnp.concatenate([row, loop])
    col = jnp.concatenate([col, loop])
    a = jnp.zeros((n, n), jnp.float32).at[col, row].add(1.0)
    deg = a.sum(axis=1)
    dinv = jnp.where(deg > 0, 1.0 / jnp.sqrt(deg), 0.0)
    a_norm = dinv[:, None] * a * dinv[None, :]
    out = a_norm @ (x @ weight.T) + bias[None, :]
    return jnp.maximum(out, 0.0), out


if __name__ == "__main__":
    key = jax.random.PRNGKey(0)
    k_x, k_w, k_e = jax.random.split(key, 3)

    num_nodes = 8
    in_feats = 16
    out_feats = 32
    num_edges = 16

    x = jax.random.normal(k_x, (num_nodes, in_feats), jnp.float32)
    edge_index = jax.random.randint(k_e, (2, num_edges), 0, num_nodes, jnp.int32)

    # Deterministic parameter init (GCNConv: glorot-like weight, zero bias).
    glorot_scale = jnp.sqrt(6.0 / (in_feats + out_feats))
    weight = jax.random.uniform(
        k_w, (out_feats, in_feats), jnp.float32, -glorot_scale, glorot_scale
    )
    bias = jnp.zeros((out_feats,), jnp.float32)

    relu_out, lin_out = gnn_layer_forward(x, edge_index, weight, bias)
    jax.block_until_ready((relu_out, lin_out))

    ref_relu, ref_lin = _reference(x, edge_index, weight, bias)
    # Only XW is rounded to bf16 for the MXU (A counts and Dinv are exact) ->
    # tolerance can be tighter than the old bf16-A_norm version.
    assert jnp.allclose(lin_out, ref_lin, atol=3e-2, rtol=3e-2)
    assert jnp.allclose(relu_out, ref_relu, atol=3e-2, rtol=3e-2)
    assert jnp.all(relu_out >= 0.0)

    print("KERNEL_OK")
</pallas_src>

<mosaic_0001>
module attributes {stable_mosaic.version = 11 : i64} {
  func.func @_gcn_kernel(%arg0: i32, %arg1: i32, %arg2: memref<128x128xi8, #tpu.memory_space<vmem>>, %arg3: memref<128x16xf32, #tpu.memory_space<vmem>>, %arg4: memref<16x128xf32, #tpu.memory_space<vmem>>, %arg5: memref<128x1xf32, #tpu.memory_space<vmem>>, %arg6: memref<1x128xf32, #tpu.memory_space<vmem>>, %arg7: memref<128x128xf32, #tpu.memory_space<vmem>>, %arg8: memref<128x128xf32, #tpu.memory_space<vmem>>) attributes {dimension_semantics = [#tpu.dimension_semantics<parallel>, #tpu.dimension_semantics<arbitrary>], iteration_bounds = array<i64: 1, 1>, scalar_prefetch = 0 : i64, scratch_operands = 0 : i64, tpu.core_type = #tpu.core_type<tc>, window_params = [{transform_indices = @transform_0, window_bounds = array<i64: 128, 128>}, {transform_indices = @transform_1, window_bounds = array<i64: 128, 16>}, {pipeline_mode = #tpu.pipeline_mode<synchronous>, transform_indices = @transform_2, window_bounds = array<i64: 16, 128>}, {transform_indices = @transform_3, window_bounds = array<i64: 128, 1>}, {pipeline_mode = #tpu.pipeline_mode<synchronous>, transform_indices = @transform_4, window_bounds = array<i64: 1, 128>}, {transform_indices = @transform_5, window_bounds = array<i64: 128, 128>}, {transform_indices = @transform_6, window_bounds = array<i64: 128, 128>}]} {
    %c0_i32 = arith.constant 0 : i32
    %0 = arith.cmpi eq, %arg1, %c0_i32 : i32
    %1 = arith.extui %0 : i1 to i32
    %c0_i32_0 = arith.constant 0 : i32
    %2 = arith.cmpi ne, %1, %c0_i32_0 : i32
    scf.if %2 {
      %cst_13 = arith.constant 0.000000e+00 : f32
      %17 = vector.broadcast %cst_13 : f32 to vector<128x128xf32>
      %c0_14 = arith.constant 0 : index
      %c0_15 = arith.constant 0 : index
      %18 = vector.load %arg8[%c0_14, %c0_15] : memref<128x128xf32, #tpu.memory_space<vmem>>, vector<128x128xf32>
      tpu.vector_store %arg8[%c0_14, %c0_15], %17 {strides = array<i32>} : memref<128x128xf32, #tpu.memory_space<vmem>>, vector<128x128xf32>,
    } else {
    }
    %c0 = arith.constant 0 : index
    %c0_1 = arith.constant 0 : index
    %3 = vector.load %arg3[%c0, %c0_1] : memref<128x16xf32, #tpu.memory_space<vmem>>, vector<128x16xf32>
    %c0_2 = arith.constant 0 : index
    %c0_3 = arith.constant 0 : index
    %4 = vector.load %arg4[%c0_2, %c0_3] : memref<16x128xf32, #tpu.memory_space<vmem>>, vector<16x128xf32>
    %cst = arith.constant dense<0.000000e+00> : vector<128x128xf32>
    %5 = tpu.matmul %3, %4, %cst {dimension_numbers = #tpu.dot_dimension_numbers<[1], [0], [0], [1], [0, 0, 1, 1], [], []>} : vector<128x16xf32>, vector<16x128xf32>, vector<128x128xf32> -> vector<128x128xf32>
    %c0_4 = arith.constant 0 : index
    %c0_5 = arith.constant 0 : index
    %6 = vector.load %arg2[%c0_4, %c0_5] : memref<128x128xi8, #tpu.memory_space<vmem>>, vector<128x128xi8>
    %7 = arith.sitofp %6 : vector<128x128xi8> to vector<128x128xf32>
    %8 = arith.truncf %7 : vector<128x128xf32> to vector<128x128xbf16>
    %c0_6 = arith.constant 0 : index
    %c0_7 = arith.constant 0 : index
    %9 = vector.load %arg8[%c0_6, %c0_7] : memref<128x128xf32, #tpu.memory_space<vmem>>, vector<128x128xf32>
    %10 = arith.truncf %5 : vector<128x128xf32> to vector<128x128xbf16>
    %cst_8 = arith.constant dense<0.000000e+00> : vector<128x128xf32>
    %11 = tpu.matmul %8, %10, %cst_8 {dimension_numbers = #tpu.dot_dimension_numbers<[1], [0], [0], [1], [0, 0, 1, 1], [], []>} : vector<128x128xbf16>, vector<128x128xbf16>, vector<128x128xf32> -> vector<128x128xf32>
    %12 = arith.addf %9, %11 : vector<128x128xf32>
    %c0_9 = arith.constant 0 : index
    %c0_10 = arith.constant 0 : index
    %13 = vector.load %arg8[%c0_9, %c0_10] : memref<128x128xf32, #tpu.memory_space<vmem>>, vector<128x128xf32>
    tpu.vector_store %arg8[%c0_9, %c0_10], %12 {strides = array<i32>} : memref<128x128xf32, #tpu.memory_space<vmem>>, vector<128x128xf32>,
    %c0_i32_11 = arith.constant 0 : i32
    %14 = arith.cmpi eq, %arg1, %c0_i32_11 : i32
    %15 = arith.extui %14 : i1 to i32
    %c0_i32_12 = arith.constant 0 : i32
    %16 = arith.cmpi ne, %15, %c0_i32_12 : i32
    scf.if %16 {
      %c0_13 = arith.constant 0 : index
      %c0_14 = arith.constant 0 : index
      %17 = vector.load %arg8[%c0_13, %c0_14] : memref<128x128xf32, #tpu.memory_space<vmem>>, vector<128x128xf32>
      %c0_15 = arith.constant 0 : index
      %c0_16 = arith.constant 0 : index
      %18 = vector.load %arg5[%c0_15, %c0_16] : memref<128x1xf32, #tpu.memory_space<vmem>>, vector<128x1xf32>
      %19 = vector.broadcast %18 : vector<128x1xf32> to vector<128x128xf32>
      %20 = arith.mulf %17, %19 : vector<128x128xf32>
      %c0_17 = arith.constant 0 : index
      %c0_18 = arith.constant 0 : index
      %21 = vector.load %arg6[%c0_17, %c0_18] : memref<1x128xf32, #tpu.memory_space<vmem>>, vector<1x128xf32>
      %22 = vector.broadcast %21 : vector<1x128xf32> to vector<128x128xf32>
      %23 = arith.addf %20, %22 : vector<128x128xf32>
      %c0_19 = arith.constant 0 : index
      %c0_20 = arith.constant 0 : index
      %24 = vector.load %arg8[%c0_19, %c0_20] : memref<128x128xf32, #tpu.memory_space<vmem>>, vector<128x128xf32>
      tpu.vector_store %arg8[%c0_19, %c0_20], %23 {strides = array<i32>} : memref<128x128xf32, #tpu.memory_space<vmem>>, vector<128x128xf32>,
      %cst_21 = arith.constant 0.000000e+00 : f32
      %25 = vector.broadcast %cst_21 : f32 to vector<128x128xf32>
      %26 = arith.maximumf %23, %25 : vector<128x128xf32>
      %c0_22 = arith.constant 0 : index
      %c0_23 = arith.constant 0 : index
      %27 = vector.load %arg7[%c0_22, %c0_23] : memref<128x128xf32, #tpu.memory_space<vmem>>, vector<128x128xf32>
      tpu.vector_store %arg7[%c0_22, %c0_23], %26 {strides = array<i32>} : memref<128x128xf32, #tpu.memory_space<vmem>>, vector<128x128xf32>,
    } else {
    }
    return
  }
  func.func @transform_0(%arg0: i32, %arg1: i32) -> (i32, i32) {
    %c0_i32 = arith.constant 0 : i32
    return %arg0, %arg1 : i32, i32
  }
  func.func @transform_1(%arg0: i32, %arg1: i32) -> (i32, i32) {
    %c0_i32 = arith.constant 0 : i32
    %c0_i32_0 = arith.constant 0 : i32
    return %arg1, %c0_i32 : i32, i32
  }
  func.func @transform_2(%arg0: i32, %arg1: i32) -> (i32, i32) {
    %c0_i32 = arith.constant 0 : i32
    %c0_i32_0 = arith.constant 0 : i32
    %c0_i32_1 = arith.constant 0 : i32
    return %c0_i32, %c0_i32_0 : i32, i32
  }
  func.func @transform_3(%arg0: i32, %arg1: i32) -> (i32, i32) {
    %c0_i32 = arith.constant 0 : i32
    %c0_i32_0 = arith.constant 0 : i32
    return %arg0, %c0_i32 : i32, i32
  }
  func.func @transform_4(%arg0: i32, %arg1: i32) -> (i32, i32) {
    %c0_i32 = arith.constant 0 : i32
    %c0_i32_0 = arith.constant 0 : i32
    %c0_i32_1 = arith.constant 0 : i32
    return %c0_i32, %c0_i32_0 : i32, i32
  }
  func.func @transform_5(%arg0: i32, %arg1: i32) -> (i32, i32) {
    %c0_i32 = arith.constant 0 : i32
    %c0_i32_0 = arith.constant 0 : i32
    return %arg0, %c0_i32 : i32, i32
  }
  func.func @transform_6(%arg0: i32, %arg1: i32) -> (i32, i32) {
    %c0_i32 = arith.constant 0 : i32
    %c0_i32_0 = arith.constant 0 : i32
    return %arg0, %c0_i32 : i32, i32
  }
}

</mosaic_0001>

<bundles_post_ra>
// kernel: tpu_custom_call.1
= control target key start
LH: loop header
LB: loop body
LE: loop exit
PB: predicated region body
PF: predicated region fallthrough
CT: control target
= control target key end

     0   :  { %12 = vsyncpa [#allocation3], 0  ;;  %vm63_vm0 = vcmask 130048   ;;  %s1043_s0 = inlined_call_operand.vmem [shape: s8[128,128], index: 0, kind: input, shape index: {}]   ;;  %s1044_s1 = inlined_call_operand.vmem [shape: f32[128,16], index: 1, kind: input, shape index: {}]   ;;  %s1045_s2 = inlined_call_operand.vmem [shape: f32[16,128], index: 2, kind: input, shape index: {}]   ;;  %s1046_s3 = inlined_call_operand.vmem [shape: f32[128,1], index: 3, kind: input, shape index: {}]   ;;  %s1047_s4 = inlined_call_operand.vmem [shape: f32[1,128], index: 4, kind: input, shape index: {}]   ;;  %s1048_s5 = inlined_call_operand.hbm [shape: f32[128,128], index: 5, kind: output, shape index: {0}]   ;;  %s1049_s6 = inlined_call_operand.hbm [shape: f32[128,128], index: 6, kind: output, shape index: {1}]  }
   0x1   :  { %v62_v0 = vld [vmem:[%s1045_s2 + $0x8] sm:$0xff]  ;;  %v61_v1 = vld [vmem:[%s1045_s2] sm:$0xff]  ;;  %v47_v4 = vld [vmem:[%s1044_s1 + $0x10] sm:$0xff] }
   0x2   :  { %v45_v2 = vld [vmem:[%s1044_s1] sm:$0xff]  ;;  %707 = vmatprep.subr.mxu0 %v62_v0  ;;  %v46_v3 = vld [vmem:[%s1044_s1 + $0x8] sm:$0xff]  ;;  %v48_v5 = vld [vmem:[%s1044_s1 + $0x18] sm:$0xff] }
   0x3   :  { %711 = vmatprep.mubr.msk.f32.mxu0 %vm63_vm0, %v45_v2  ;;  %708 = vmatpush3.msra.mxu0 %v62_v0 }
   0x4   :  { %709 = vmatprep.subr.mxu0 %v61_v1 }
   0x5   :  { %710 = vmatpush3.msra.mxu0 %v61_v1 }
   0x6   :  { %712 = vmatmul.mubr.msk.f32.vlgmr.msra.gmra.mxu0 %vm63_vm0, %v46_v3 }
   0x7   :  { %714 = vmatprep.mubr.msk.f32.mxu0 %vm63_vm0, %v47_v4 }
   0x8   :  { %13 = vsyncpa [#allocation5], 0  ;;  %v49_v6 = vld [vmem:[%s1044_s1 + $0x20] sm:$0xff]  ;;  %v50_v7 = vld [vmem:[%s1044_s1 + $0x28] sm:$0xff]  ;;  %v835_v24 = vmov 0   ;;  %s837_s21 = smov [#allocation2]  }
   0x9   :  { %v51_v8 = vld [vmem:[%s1044_s1 + $0x30] sm:$0xff]  ;;  %v52_v9 = vld [vmem:[%s1044_s1 + $0x38] sm:$0xff]  ;;  %v53_v10 = vld [vmem:[%s1044_s1 + $0x40] sm:$0xff]  ;;  %790 = vset.pattern.permute.xlu1 %v835_v24  ;;  %789 = vset.pattern.permute.xlu0 %v835_v24  ;;  %s629_s22 = sshll.u32 %s837_s21, 4  ;;  %s630_s22 = int_to_ptr.vmem [resolvable:$true] %s629_s22 }
   0xa   :  { %715 = vmatmul.mubr.msk.f32.gmra.mxu0 %vm63_vm0, %v48_v5  ;;  %v54_v11 = vld [vmem:[%s1044_s1 + $0x48] sm:$0xff]  ;;  %v55_v12 = vld [vmem:[%s1044_s1 + $0x50] sm:$0xff]  ;;  %v56_v13 = vld [vmem:[%s1044_s1 + $0x58] sm:$0xff] }
   0xb   :  { %717 = vmatprep.mubr.msk.f32.mxu0 %vm63_vm0, %v49_v6  ;;  %v57_v14 = vld [vmem:[%s1044_s1 + $0x60] sm:$0xff]  ;;  %v58_v15 = vld [vmem:[%s1044_s1 + $0x68] sm:$0xff]  ;;  %v59_v16 = vld [vmem:[%s1044_s1 + $0x70] sm:$0xff] }
   0xc   :  { %v60_v17 = vld [vmem:[%s1044_s1 + $0x78] sm:$0xff]  ;;  %v948_v18 = vld [vmem:[%s1043_s0] sm:$0xff]  ;;  %v953_v19 = vld [vmem:[%s1043_s0 + $0x8] sm:$0xff] }
   0xd   :  { %v261_v20 = vunpack.c.l.s8.bf16 %v948_v18  ;;  %v263_v21 = vunpack.c.l.s8.bf16 %v953_v19  ;;  %v443_v22 = vld [vmem:[%s1046_s3 + $0x10] sm:$0xff]  ;;  %v441_v23 = vld [vmem:[%s1046_s3] sm:$0xff]  ;;  %v444_v25 = vld [vmem:[%s1046_s3 + $0x18] sm:$0xff]  ;;  %v262_v0 = vunpack.c.h.s8.bf16 %v948_v18  ;;  %v264_v1 = vunpack.c.h.s8.bf16 %v953_v19 }
   0xe   :  { %718 = vmatmul.mubr.msk.f32.gmra.mxu0 %vm63_vm0, %v50_v7  ;;  %469 = vperm.xlu1 %790, %v443_v22   ;;  %v442_v26 = vld [vmem:[%s1046_s3 + $0x8] sm:$0xff]  ;;  %v445_v28 = vld [vmem:[%s1046_s3 + $0x20] sm:$0xff]  ;;  %v448_v29 = vld [vmem:[%s1046_s3 + $0x38] sm:$0xff] }
   0xf   :  { %720 = vmatprep.mubr.msk.f32.mxu0 %vm63_vm0, %v51_v8  ;;  %755 = vmatprep.mubr.bf16.mxu1 %v263_v21  ;;  %v446_v27 = vld [vmem:[%s1046_s3 + $0x28] sm:$0xff]  ;;  %v447_v30 = vld [vmem:[%s1046_s3 + $0x30] sm:$0xff]  ;;  %v449_v32 = vld [vmem:[%s1046_s3 + $0x40] sm:$0xff] }
  0x10   :  { %459 = vperm.xlu0 %789, %v441_v23   ;;  %v450_v31 = vld [vmem:[%s1046_s3 + $0x48] sm:$0xff]  ;;  %v452_v33 = vld [vmem:[%s1046_s3 + $0x58] sm:$0xff]  ;;  %v451_v34 = vld [vmem:[%s1046_s3 + $0x50] sm:$0xff] }
  0x11   :  { %v454_v35 = vld [vmem:[%s1046_s3 + $0x68] sm:$0xff]  ;;  %v453_v36 = vld [vmem:[%s1046_s3 + $0x60] sm:$0xff]  ;;  %v456_v37 = vld [vmem:[%s1046_s3 + $0x78] sm:$0xff] }
  0x12   :  { %721 = vmatmul.mubr.msk.f32.gmra.mxu0 %vm63_vm0, %v52_v9  ;;  %474 = vperm.xlu1 %790, %v444_v25   ;;  %v455_v38 = vld [vmem:[%s1046_s3 + $0x70] sm:$0xff]  ;;  %v260_v3 = vld [vmem:[%s1043_s0 + $0x18] sm:$0xff]  ;;  %v1016_v18 = vld [vmem:[%s1047_s4] ss:$0 sm:$0xff] }
  0x13   :  { %723 = vmatprep.mubr.msk.f32.mxu0 %vm63_vm0, %v53_v10  ;;  %v259_v63 = vld [vmem:[%s1043_s0 + $0x10] sm:$0xff]  ;;  %v267_v5 = vunpack.c.l.s8.bf16 %v260_v3  ;;  %v268_v6 = vunpack.c.h.s8.bf16 %v260_v3  ;;  %s836_s0 = smov [#allocation4]  }
  0x14   :  { %464 = vperm.xlu0 %789, %v442_v26   ;;  %v265_v2 = vunpack.c.l.s8.bf16 %v259_v63  ;;  %v266_v4 = vunpack.c.h.s8.bf16 %v259_v63  ;;  %s641_s4 = sshll.u32 %s836_s0, 4  ;;  %s642_s4 = int_to_ptr.vmem [resolvable:$true] %s641_s4 }
  0x15   :  { %s791_s23 = scalar_lea.vmem %s642_s4, 2048  ;;  %p796_p1 = scmp.lt.s32.totalorder %s642_s4, %s642_s4 }
  0x16   :  { %724 = vmatmul.mubr.msk.f32.gmra.mxu0 %vm63_vm0, %v54_v11  ;;  %484 = vperm.xlu1 %790, %v446_v27   ;;  %p792_p0 = scmp.ne.s32.totalorder %s642_s4, %s791_s23  ;;  %p797_p2 = scmp.lt.s32.totalorder %s791_s23, %s791_s23 }
  0x17   :  { %726 = vmatprep.mubr.msk.f32.mxu0 %vm63_vm0, %v55_v12 }
  0x18   :  { %479 = vperm.xlu0 %789, %v445_v28   ;;  %p798_p3 = por %p797_p2, %p796_p1 }
  0x1a   :  { %727 = vmatmul.mubr.msk.f32.gmra.mxu0 %vm63_vm0, %v56_v13  ;;  %494 = vperm.xlu1 %790, %v448_v29   ;;  %p799_p4 = pnand %p798_p3, %p792_p0 }
  0x1b   :  { %729 = vmatprep.mubr.msk.f32.mxu0 %vm63_vm0, %v57_v14 }
  0x1c   :  { %489 = vperm.xlu0 %789, %v447_v30  }
  0x1e   :  { %730 = vmatmul.mubr.msk.f32.gmra.mxu0 %vm63_vm0, %v58_v15  ;;  %504 = vperm.xlu1 %790, %v450_v31  }
  0x1f   :  { %732 = vmatprep.mubr.msk.f32.mxu0 %vm63_vm0, %v59_v16 }
  0x20   :  { %499 = vperm.xlu0 %789, %v449_v32  }
  0x22   :  { %733 = vmatmul.mubr.msk.f32.gmra.mxu0 %vm63_vm0, %v60_v17  ;;  %514 = vperm.xlu1 %790, %v452_v33  }
  0x23   :  { %751 = vmatprep.mubr.bf16.mxu0 %v261_v20 }
  0x24   :  { %509 = vperm.xlu0 %789, %v451_v34  }
  0x26   :  { %524 = vperm.xlu1 %790, %v454_v35  }
  0x28   :  { %519 = vperm.xlu0 %789, %v453_v36  }
  0x2a   :  { %534 = vperm.xlu1 %790, %v456_v37  }
  0x2c   :  { %529 = vperm.xlu0 %789, %v455_v38  }
  0x89   :  { %v470_v8 = vpop.permute.xlu1 %469 }
  0x8b   :  { %v460_v7 = vpop.permute.xlu0 %459 }
  0x8d   :  { %v475_v10 = vpop.permute.xlu1 %474 }
  0x8f   :  { %v465_v9 = vpop.permute.xlu0 %464 }
  0x91   :  { %v485_v12 = vpop.permute.xlu1 %484 }
  0x93   :  { %v480_v11 = vpop.permute.xlu0 %479 }
  0x95   :  { %v495_v14 = vpop.permute.xlu1 %494 }
  0x97   :  { %v490_v13 = vpop.permute.xlu0 %489 }
  0x99   :  { %v1018_v21 = vpop.permute.xlu1 %504 }
  0x9b   :  { %v500_v15 = vpop.permute.xlu0 %499 }
  0x9f   :  { %v510_v26 = vpop.permute.xlu0 %509 }
  0xc6   :  { %v713_v39 = vpop.f32.mrf.mxu0 }
  0xc8   :  { %v178_v40 = vpop.f32.mrf.mxu0 }
  0xc9   :  { %v285_v62 = vpack.c.bf16 %v713_v39, %v178_v40 }
  0xca   :  { %v716_v41 = vpop.f32.mrf.mxu0 }
  0xcc   :  { %v188_v42 = vpop.f32.mrf.mxu0 }
  0xcd   :  { %v286_v61 = vpack.c.bf16 %v716_v41, %v188_v42  ;;  %v515_v42 = vpop.permute.xlu1 %514 }
  0xce   :  { %v719_v43 = vpop.f32.mrf.mxu0 }
  0xd0   :  { %v198_v44 = vpop.f32.mrf.mxu0 }
  0xd1   :  { %v287_v60 = vpack.c.bf16 %v719_v43, %v198_v44  ;;  %v525_v63 = vpop.permute.xlu1 %524 }
  0xd2   :  { %v722_v45 = vpop.f32.mrf.mxu0 }
  0xd4   :  { %v208_v46 = vpop.f32.mrf.mxu0 }
  0xd5   :  { %v288_v59 = vpack.c.bf16 %v722_v45, %v208_v46 }
  0xd6   :  { %v725_v47 = vpop.f32.mrf.mxu0 }
  0xd8   :  { %v218_v48 = vpop.f32.mrf.mxu0 }
  0xd9   :  { %v289_v58 = vpack.c.bf16 %v725_v47, %v218_v48 }
  0xda   :  { %v728_v49 = vpop.f32.mrf.mxu0 }
  0xdc   :  { %v228_v50 = vpop.f32.mrf.mxu0 }
  0xdd   :  { %v290_v57 = vpack.c.bf16 %v728_v49, %v228_v50  ;;  %v520_v49 = vpop.permute.xlu0 %519 }
  0xde   :  { %v731_v51 = vpop.f32.mrf.mxu0 }
  0xe0   :  { %v238_v52 = vpop.f32.mrf.mxu0 }
  0xe1   :  { %v291_v56 = vpack.c.bf16 %v731_v51, %v238_v52 }
  0xe2   :  { %v734_v53 = vpop.f32.mrf.mxu0 }
  0xe4   :  { %v248_v54 = vpop.f32.mrf.mxu0 }
  0xe5   :  { %v292_v55 = vpack.c.bf16 %v734_v53, %v248_v54 }
  0xe7   :  { %735 = vmatprep.subr.bf16.mxu0 %v292_v55  ;;  %767 = vmatprep.subr.bf16.mxu1 %v292_v55 }
  0xe8   :  { %736 = vmatpush3.bf16.msra.mxu0 %v292_v55  ;;  %775 = vmatpush3.bf16.msra.mxu1 %v292_v55 }
  0xe9   :  { %737 = vmatprep.subr.bf16.mxu0 %v291_v56  ;;  %768 = vmatprep.subr.bf16.mxu1 %v291_v56 }
  0xec   :  { %738 = vmatpush3.bf16.msra.mxu0 %v291_v56  ;;  %776 = vmatpush3.bf16.msra.mxu1 %v291_v56 }
  0xed   :  { %739 = vmatprep.subr.bf16.mxu0 %v290_v57  ;;  %769 = vmatprep.subr.bf16.mxu1 %v290_v57 }
  0xf0   :  { %740 = vmatpush3.bf16.msra.mxu0 %v290_v57  ;;  %777 = vmatpush3.bf16.msra.mxu1 %v290_v57 }
  0xf1   :  { %741 = vmatprep.subr.bf16.mxu0 %v289_v58  ;;  %770 = vmatprep.subr.bf16.mxu1 %v289_v58 }
  0xf4   :  { %742 = vmatpush3.bf16.msra.mxu0 %v289_v58  ;;  %778 = vmatpush3.bf16.msra.mxu1 %v289_v58 }
  0xf5   :  { %743 = vmatprep.subr.bf16.mxu0 %v288_v59  ;;  %771 = vmatprep.subr.bf16.mxu1 %v288_v59 }
  0xf8   :  { %744 = vmatpush3.bf16.msra.mxu0 %v288_v59  ;;  %779 = vmatpush3.bf16.msra.mxu1 %v288_v59 }
  0xf9   :  { %745 = vmatprep.subr.bf16.mxu0 %v287_v60  ;;  %772 = vmatprep.subr.bf16.mxu1 %v287_v60 }
  0xfc   :  { %746 = vmatpush3.bf16.msra.mxu0 %v287_v60  ;;  %780 = vmatpush3.bf16.msra.mxu1 %v287_v60 }
  0xfd   :  { %747 = vmatprep.subr.bf16.mxu0 %v286_v61  ;;  %773 = vmatprep.subr.bf16.mxu1 %v286_v61 }
 0x100   :  { %748 = vmatpush3.bf16.msra.mxu0 %v286_v61  ;;  %781 = vmatpush3.bf16.msra.mxu1 %v286_v61 }
 0x101   :  { %749 = vmatprep.subr.bf16.mxu0 %v285_v62  ;;  %774 = vmatprep.subr.bf16.mxu1 %v285_v62 }
 0x104   :  { %750 = vmatpush3.bf16.msra.mxu0 %v285_v62  ;;  %782 = vmatpush3.bf16.msra.mxu1 %v285_v62 }
 0x107   :  { %752 = vmatmul.mubr.bf16.vlgmr.msra.gmra.mxu0 %v262_v0  ;;  %756 = vmatmul.mubr.bf16.vlgmr.msra.gmra.mxu1 %v264_v1 }
 0x108   :  { %759 = vmatprep.mubr.bf16.mxu1 %v265_v2 }
 0x10f   :  { %760 = vmatmul.mubr.bf16.gmra.mxu1 %v266_v4  ;;  %v530_v4 = vpop.permute.xlu0 %529 }
 0x110   :  { %763 = vmatprep.mubr.bf16.mxu1 %v267_v5 }
 0x117   :  { %764 = vmatmul.mubr.bf16.gmra.mxu1 %v268_v6 }
 0x1c7   :  { %v753_v16 = vpop.f32.mrf.mxu0  ;;  %v757_v17 = vpop.f32.mrf.mxu1 }
 0x1c8   :  { %v539_v22 = vmul.f32 %v753_v16, %v470_v8  ;;  %v543_v23 = vmul.f32 %v757_v17, %v490_v13  ;;  %v535_v13 = vpop.permute.xlu1 %534 }
 0x1c9   :  { %v327_v19 = vpop.f32.mrf.mxu0  ;;  %v343_v20 = vpop.f32.mrf.mxu1 }
 0x1ca   :  { %v562_v27 = vadd.f32 %v1016_v18, %v539_v22  ;;  %v566_v28 = vadd.f32 %v1016_v18, %v543_v23  ;;  %v537_v29 = vmul.f32 %v460_v7, %v327_v19  ;;  %v541_v30 = vmul.f32 %v480_v11, %v343_v20 }
 0x1cb   :  { %v754_v24 = vpop.f32.mrf.mxu0  ;;  %v758_v25 = vpop.f32.mrf.mxu1 }
 0x1cc   :  { %578 = vst [vmem:[#allocation4 + $0x10] sm:$0xff] %v562_v27  ;;  %v594_v33 = vmax.f32 %v562_v27, 0.0  ;;  %582 = vst [vmem:[#allocation4 + $0x30] sm:$0xff] %v566_v28  ;;  %v598_v34 = vmax.f32 %v566_v28, 0.0  ;;  %v560_v35 = vadd.f32 %v1016_v18, %v537_v29  ;;  %v564_v36 = vadd.f32 %v1016_v18, %v541_v30 }
 0x1cd   :  { %v330_v31 = vpop.f32.mrf.mxu0  ;;  %v346_v32 = vpop.f32.mrf.mxu1  ;;  %v540_v37 = vmul.f32 %v754_v24, %v475_v10  ;;  %v544_v38 = vmul.f32 %v758_v25, %v495_v14 }
 0x1ce   :  { %610 = vst [vmem:[#allocation2 + $0x10] sm:$0xff] %v594_v33  ;;  %614 = vst [vmem:[#allocation2 + $0x30] sm:$0xff] %v598_v34  ;;  %v592_v40 = vmax.f32 %v560_v35, 0.0  ;;  %v596_v41 = vmax.f32 %v564_v36, 0.0  ;;  %v538_v45 = vmul.f32 %v465_v9, %v330_v31  ;;  %v542_v46 = vmul.f32 %v485_v12, %v346_v32 }
 0x1cf   :  { %v761_v39 = vpop.f32.mrf.mxu1  ;;  %576 = vst [vmem:[#allocation4] sm:$0xff] %v560_v35  ;;  %580 = vst [vmem:[#allocation4 + $0x20] sm:$0xff] %v564_v36  ;;  %v563_v43 = vadd.f32 %v1016_v18, %v540_v37  ;;  %v567_v44 = vadd.f32 %v1016_v18, %v544_v38 }
 0x1d0   :  { %608 = vst [vmem:[#allocation2] sm:$0xff] %v592_v40  ;;  %612 = vst [vmem:[#allocation2 + $0x20] sm:$0xff] %v596_v41  ;;  %v547_v48 = vmul.f32 %v761_v39, %v510_v26  ;;  %v561_v52 = vadd.f32 %v1016_v18, %v538_v45  ;;  %v565_v53 = vadd.f32 %v1016_v18, %v542_v46 }
 0x1d1   :  { %v359_v47 = vpop.f32.mrf.mxu1  ;;  %579 = vst [vmem:[#allocation4 + $0x18] sm:$0xff] %v563_v43  ;;  %v595_v50 = vmax.f32 %v563_v43, 0.0  ;;  %583 = vst [vmem:[#allocation4 + $0x38] sm:$0xff] %v567_v44  ;;  %v599_v51 = vmax.f32 %v567_v44, 0.0 }
 0x1d2   :  { %v570_v55 = vadd.f32 %v1016_v18, %v547_v48  ;;  %v545_v56 = vmul.f32 %v500_v15, %v359_v47  ;;  %577 = vst [vmem:[#allocation4 + $0x8] sm:$0xff] %v561_v52  ;;  %v593_v57 = vmax.f32 %v561_v52, 0.0  ;;  %581 = vst [vmem:[#allocation4 + $0x28] sm:$0xff] %v565_v53  ;;  %v597_v58 = vmax.f32 %v565_v53, 0.0 }
 0x1d3   :  { %v762_v54 = vpop.f32.mrf.mxu1  ;;  %611 = vst [vmem:[#allocation2 + $0x18] sm:$0xff] %v595_v50  ;;  %615 = vst [vmem:[#allocation2 + $0x38] sm:$0xff] %v599_v51 }
 0x1d4   :  { %586 = vst [vmem:[#allocation4 + $0x50] sm:$0xff] %v570_v55  ;;  %v602_v60 = vmax.f32 %v570_v55, 0.0  ;;  %v568_v61 = vadd.f32 %v1016_v18, %v545_v56  ;;  %v548_v62 = vmul.f32 %v762_v54, %v515_v42  ;;  %609 = vst [vmem:[#allocation2 + $0x8] sm:$0xff] %v593_v57 }
 0x1d5   :  { %v362_v59 = vpop.f32.mrf.mxu1  ;;  %613 = vst [vmem:[#allocation2 + $0x28] sm:$0xff] %v597_v58 }
 0x1d6   :  { %618 = vst [vmem:[#allocation2 + $0x50] sm:$0xff] %v602_v60  ;;  %584 = vst [vmem:[#allocation4 + $0x40] sm:$0xff] %v568_v61  ;;  %v600_v1 = vmax.f32 %v568_v61, 0.0  ;;  %v571_v2 = vadd.f32 %v1016_v18, %v548_v62  ;;  %v546_v3 = vmul.f32 %v1018_v21, %v362_v59 }
 0x1d7   :  { %v765_v0 = vpop.f32.mrf.mxu1 }
 0x1d8   :  { %616 = vst [vmem:[#allocation2 + $0x40] sm:$0xff] %v600_v1  ;;  %587 = vst [vmem:[#allocation4 + $0x58] sm:$0xff] %v571_v2  ;;  %v603_v6 = vmax.f32 %v571_v2, 0.0  ;;  %v569_v7 = vadd.f32 %v1016_v18, %v546_v3  ;;  %v551_v8 = vmul.f32 %v765_v0, %v530_v4 }
 0x1d9   :  { %v375_v5 = vpop.f32.mrf.mxu1 }
 0x1da   :  { %619 = vst [vmem:[#allocation2 + $0x58] sm:$0xff] %v603_v6  ;;  %585 = vst [vmem:[#allocation4 + $0x48] sm:$0xff] %v569_v7  ;;  %v601_v10 = vmax.f32 %v569_v7, 0.0  ;;  %v574_v11 = vadd.f32 %v1016_v18, %v551_v8  ;;  %v549_v12 = vmul.f32 %v520_v49, %v375_v5 }
 0x1db   :  { %v766_v9 = vpop.f32.mrf.mxu1 }
 0x1dc   :  { %617 = vst [vmem:[#allocation2 + $0x48] sm:$0xff] %v601_v10  ;;  %590 = vst [vmem:[#allocation4 + $0x70] sm:$0xff] %v574_v11  ;;  %v606_v15 = vmax.f32 %v574_v11, 0.0  ;;  %v572_v16 = vadd.f32 %v1016_v18, %v549_v12  ;;  %v552_v17 = vmul.f32 %v766_v9, %v535_v13 }
 0x1dd   :  { %v378_v14 = vpop.f32.mrf.mxu1 }
 0x1de   :  { %622 = vst [vmem:[#allocation2 + $0x70] sm:$0xff] %v606_v15  ;;  %588 = vst [vmem:[#allocation4 + $0x60] sm:$0xff] %v572_v16  ;;  %v604_v19 = vmax.f32 %v572_v16, 0.0  ;;  %v575_v20 = vadd.f32 %v1016_v18, %v552_v17  ;;  %v550_v21 = vmul.f32 %v525_v63, %v378_v14 }
 0x1e0   :  { %620 = vst [vmem:[#allocation2 + $0x60] sm:$0xff] %v604_v19  ;;  %591 = vst [vmem:[#allocation4 + $0x78] sm:$0xff] %v575_v20  ;;  %v607_v22 = vmax.f32 %v575_v20, 0.0  ;;  %v573_v23 = vadd.f32 %v1016_v18, %v550_v21 }
 0x1e2   :  { %623 = vst [vmem:[#allocation2 + $0x78] sm:$0xff] %v607_v22  ;;  %589 = vst [vmem:[#allocation4 + $0x68] sm:$0xff] %v573_v23  ;;  %v605_v24 = vmax.f32 %v573_v23, 0.0 }
 0x1e3   :  { %802 = shalt.err (!%p799_p4)
}
 0x1e4   :  { %s838_s24 = smov 128   ;;  %s839_s25 = smov 8   ;;  %621 = vst [vmem:[#allocation2 + $0x68] sm:$0xff] %v605_v24 }
 0x1e5   :  { %647 = dma.vmem_to_hbm [thread:$0]  %s642_s4, 2048, %s1049_s6, [#allocation5], %s838_s24, %s838_s24, %s839_s25  }
 0x1e6   :  { %s811_s28 = scalar_lea.vmem %s630_s22, 2048  ;;  %p816_p6 = scmp.lt.s32.totalorder %s630_s22, %s630_s22 }
 0x1e7   :  { %p812_p5 = scmp.ne.s32.totalorder %s630_s22, %s811_s28  ;;  %p817_p7 = scmp.lt.s32.totalorder %s811_s28, %s811_s28 }
 0x1e9   :  { %p818_p8 = por %p817_p7, %p816_p6 }
 0x1eb   :  { %p819_p9 = pnand %p818_p8, %p812_p5 }
 0x1ed   :  { %822 = shalt.err (!%p819_p9)
}
 0x1ee   :  { %635 = dma.vmem_to_hbm [thread:$0]  %s630_s22, 2048, %s1048_s5, [#allocation3], %s838_s24, %s838_s24, %s839_s25  }
 0x1ef   :  { %831 = dma.done.wait [#allocation3], 2048  }
 0x1f0   :  { %832 = vsyncadd [#allocation3], 4294965248 }
 0x1f1   :  { %833 = dma.done.wait [#allocation5], 2048  }
 0x1f2   :  { %834 = vsyncadd [#allocation5], 4294965248 }
 0x1f3   :  { %654 = vsyncpa [#allocation3], 1 }
 0x1f4   :  { %655 = vsyncpa [#allocation5], 1 }

</bundles_post_ra>
